<compile_context>
chip_gen: v7x
topology: tpu7x:2x2x1
jax: 0.10.0
libtpu: 0.0.40
codegen_flags: <defaults>
</compile_context>

<pallas_src>
import jax
import jax.numpy as jnp
from jax import lax
from jax.experimental import pallas as pl
from jax.experimental.pallas import tpu as pltpu

P_DROP = 0.1
SCALE = 1.0 / (1.0 - P_DROP)
LN_EPS = 1e-5


def _round_up(n, m):
    return ((n + m - 1) // m) * m


def _ff_kernel(x_ref, mask_ref, w1_ref, b1_ref, w2_ref, b2_ref, alpha_ref,
               beta_ref, out_ref):
    # ---- first projection + ReLU (bf16 operands, f32 accumulation) ----
    x = x_ref[...]                                                   # (TM, D) bf16
    h = jnp.dot(x, w1_ref[...], preferred_element_type=jnp.float32)  # (TM, FF) f32
    h = jnp.maximum(h + b1_ref[...], 0.0)

    # ---- inverted dropout from precomputed int8 keep mask ----
    keep = mask_ref[...] != 0
    d = jnp.where(keep, h * SCALE, 0.0)

    # ---- second projection + residual ----
    y = jnp.dot(d.astype(jnp.bfloat16), w2_ref[...],
                preferred_element_type=jnp.float32)
    y = y + b2_ref[...] + x.astype(jnp.float32)                      # (TM, D) f32

    # ---- layernorm over last dim with affine alpha/beta ----
    mean = jnp.mean(y, axis=-1, keepdims=True)
    cent = y - mean
    var = jnp.mean(cent * cent, axis=-1, keepdims=True)
    out_ref[...] = (cent * lax.rsqrt(var + LN_EPS)) * alpha_ref[...] + beta_ref[...]


def feed_forward(x, w1, b1, w2, b2, alpha, beta, *, key):
    """x: (B, S, D). Returns (out (B,S,D) f32, sel (B,S,FF) f32, scale scalar)."""
    B, S, D = x.shape
    FF = w1.shape[1]
    N = B * S

    # Dropout keep-mask (P(keep) = 1 - p) sampled with the portable JAX PRNG;
    # the kernel only applies it and the same mask is returned as `sel`.
    keep = jax.random.bernoulli(key, 1.0 - P_DROP, (N, FF))

    # Row tiling: TM rows per grid step; if N is small, one full-extent block.
    TM = 256 if N >= 256 else _round_up(N, 8)
    Npad = _round_up(N, TM)

    x2d = x.reshape(N, D).astype(jnp.bfloat16)
    keep_i8 = keep.astype(jnp.int8)
    if Npad != N:
        x2d = jnp.pad(x2d, ((0, Npad - N), (0, 0)))
        keep_i8 = jnp.pad(keep_i8, ((0, Npad - N), (0, 0)))

    w1b = w1.astype(jnp.bfloat16)
    w2b = w2.astype(jnp.bfloat16)
    b1r = b1.reshape(1, FF).astype(jnp.float32)
    b2r = b2.reshape(1, D).astype(jnp.float32)
    ar = alpha.reshape(1, D).astype(jnp.float32)
    br = beta.reshape(1, D).astype(jnp.float32)

    grid = (Npad // TM,)

    # VMEM budget: double-buffered row tiles + resident weights + f32 intermediates.
    tile_bytes = TM * D * 2 + TM * FF * 1 + TM * D * 4
    resident_bytes = 2 * D * FF * 2 + (FF + 3 * D) * 4
    scratch_bytes = 8 * TM * FF + 8 * TM * D
    need = 2 * tile_bytes + resident_bytes + scratch_bytes + (2 << 20)
    vmem_limit = int(min(max(need, 32 * 1024 * 1024), 48 * 1024 * 1024))

    cost = pl.CostEstimate(
        flops=4 * Npad * D * FF,
        transcendentals=0,
        bytes_accessed=Npad * D * 2 + Npad * FF + 2 * D * FF * 2 + Npad * D * 4,
    )

    out2d = pl.pallas_call(
        _ff_kernel,
        out_shape=jax.ShapeDtypeStruct((Npad, D), jnp.float32),
        grid=grid,
        in_specs=[
            pl.BlockSpec((TM, D), lambda i: (i, 0)),    # x row tile (bf16)
            pl.BlockSpec((TM, FF), lambda i: (i, 0)),   # dropout keep mask (int8)
            pl.BlockSpec((D, FF), lambda i: (0, 0)),    # w1, resident
            pl.BlockSpec((1, FF), lambda i: (0, 0)),    # b1
            pl.BlockSpec((FF, D), lambda i: (0, 0)),    # w2, resident
            pl.BlockSpec((1, D), lambda i: (0, 0)),     # b2
            pl.BlockSpec((1, D), lambda i: (0, 0)),     # alpha
            pl.BlockSpec((1, D), lambda i: (0, 0)),     # beta
        ],
        out_specs=pl.BlockSpec((TM, D), lambda i: (i, 0)),
        compiler_params=pltpu.CompilerParams(
            dimension_semantics=("parallel",),
            vmem_limit_bytes=vmem_limit,
        ),
        cost_estimate=cost,
    )(x2d, keep_i8, w1b, b1r, w2b, b2r, ar, br)

    out = out2d[:N].reshape(B, S, D)
    sel = keep.astype(jnp.float32).reshape(B, S, FF)
    scale = jnp.float32(SCALE)
    return out, sel, scale


def _reference(x, w1, b1, w2, b2, alpha, beta, sel):
    h = jnp.maximum(jnp.matmul(x, w1) + b1, 0.0)
    d = h * sel * SCALE
    y = jnp.matmul(d, w2) + b2 + x
    mean = y.mean(-1, keepdims=True)
    var = ((y - mean) ** 2).mean(-1, keepdims=True)
    return (y - mean) / jnp.sqrt(var + LN_EPS) * alpha + beta


if __name__ == "__main__":
    B, S, D, FF = 2, 8, 128, 256   # lane-dense small shapes (D, FF multiples of 128)

    key = jax.random.PRNGKey(0)
    kx, kw1, kb1, kw2, kb2, kdrop = jax.random.split(key, 6)

    x = jax.random.normal(kx, (B, S, D), dtype=jnp.float32)
    w1 = jax.random.normal(kw1, (D, FF), dtype=jnp.float32) * 0.1
    b1 = jax.random.normal(kb1, (FF,), dtype=jnp.float32) * 0.1
    w2 = jax.random.normal(kw2, (FF, D), dtype=jnp.float32) * 0.1
    b2 = jax.random.normal(kb2, (D,), dtype=jnp.float32) * 0.1
    alpha = jnp.ones((D,), dtype=jnp.float32)   # layernorm gain
    beta = jnp.zeros((D,), dtype=jnp.float32)   # layernorm bias

    out, sel, scale = feed_forward(x, w1, b1, w2, b2, alpha, beta, key=kdrop)
    jax.block_until_ready((out, sel, scale))

    assert out.shape == (B, S, D)
    assert sel.shape == (B, S, FF)
    assert bool(jnp.isfinite(out).all())

    # Loose check against a pure-JAX f32 reference (kernel uses bf16 operands).
    ref = _reference(x, w1, b1, w2, b2, alpha, beta, sel)
    max_err = float(jnp.max(jnp.abs(out - ref)))
    assert max_err < 0.25, f"max abs error {max_err}"

    print("KERNEL_OK")
</pallas_src>

<mosaic_0001>
module attributes {stable_mosaic.version = 11 : i64} {
  func.func @_ff_kernel(%arg0: i32, %arg1: memref<16x128xbf16, #tpu.memory_space<vmem>>, %arg2: memref<16x256xi8, #tpu.memory_space<vmem>>, %arg3: memref<128x256xbf16, #tpu.memory_space<vmem>>, %arg4: memref<1x256xf32, #tpu.memory_space<vmem>>, %arg5: memref<256x128xbf16, #tpu.memory_space<vmem>>, %arg6: memref<1x128xf32, #tpu.memory_space<vmem>>, %arg7: memref<1x128xf32, #tpu.memory_space<vmem>>, %arg8: memref<1x128xf32, #tpu.memory_space<vmem>>, %arg9: memref<16x128xf32, #tpu.memory_space<vmem>>) attributes {dimension_semantics = [#tpu.dimension_semantics<parallel>], iteration_bounds = array<i64: 1>, scalar_prefetch = 0 : i64, scratch_operands = 0 : i64, tpu.core_type = #tpu.core_type<tc>, window_params = [{transform_indices = @transform_0, window_bounds = array<i64: 16, 128>}, {transform_indices = @transform_1, window_bounds = array<i64: 16, 256>}, {pipeline_mode = #tpu.pipeline_mode<synchronous>, transform_indices = @transform_2, window_bounds = array<i64: 128, 256>}, {pipeline_mode = #tpu.pipeline_mode<synchronous>, transform_indices = @transform_3, window_bounds = array<i64: 1, 256>}, {pipeline_mode = #tpu.pipeline_mode<synchronous>, transform_indices = @transform_4, window_bounds = array<i64: 256, 128>}, {pipeline_mode = #tpu.pipeline_mode<synchronous>, transform_indices = @transform_5, window_bounds = array<i64: 1, 128>}, {pipeline_mode = #tpu.pipeline_mode<synchronous>, transform_indices = @transform_6, window_bounds = array<i64: 1, 128>}, {pipeline_mode = #tpu.pipeline_mode<synchronous>, transform_indices = @transform_7, window_bounds = array<i64: 1, 128>}, {transform_indices = @transform_8, window_bounds = array<i64: 16, 128>}]} {
    %c0 = arith.constant 0 : index
    %c0_0 = arith.constant 0 : index
    %0 = vector.load %arg1[%c0, %c0_0] : memref<16x128xbf16, #tpu.memory_space<vmem>>, vector<16x128xbf16>
    %c0_1 = arith.constant 0 : index
    %c0_2 = arith.constant 0 : index
    %1 = vector.load %arg3[%c0_1, %c0_2] : memref<128x256xbf16, #tpu.memory_space<vmem>>, vector<128x256xbf16>
    %cst = arith.constant dense<0.000000e+00> : vector<16x256xf32>
    %2 = tpu.matmul %0, %1, %cst {dimension_numbers = #tpu.dot_dimension_numbers<[1], [0], [0], [1], [0, 0, 1, 1], [], []>} : vector<16x128xbf16>, vector<128x256xbf16>, vector<16x256xf32> -> vector<16x256xf32>
    %c0_3 = arith.constant 0 : index
    %c0_4 = arith.constant 0 : index
    %3 = vector.load %arg4[%c0_3, %c0_4] : memref<1x256xf32, #tpu.memory_space<vmem>>, vector<1x256xf32>
    %4 = vector.broadcast %3 : vector<1x256xf32> to vector<16x256xf32>
    %5 = arith.addf %2, %4 : vector<16x256xf32>
    %cst_5 = arith.constant 0.000000e+00 : f32
    %6 = vector.broadcast %cst_5 : f32 to vector<16x256xf32>
    %7 = arith.maximumf %5, %6 : vector<16x256xf32>
    %c0_6 = arith.constant 0 : index
    %c0_7 = arith.constant 0 : index
    %8 = vector.load %arg2[%c0_6, %c0_7] : memref<16x256xi8, #tpu.memory_space<vmem>>, vector<16x256xi8>
    %c0_i8 = arith.constant 0 : i8
    %9 = vector.broadcast %c0_i8 : i8 to vector<16x256xi8>
    %10 = arith.cmpi ne, %8, %9 : vector<16x256xi8>
    %cst_8 = arith.constant 1.11111116 : f32
    %11 = vector.broadcast %cst_8 : f32 to vector<16x256xf32>
    %12 = arith.mulf %7, %11 : vector<16x256xf32>
    %cst_9 = arith.constant 0.000000e+00 : f32
    %13 = vector.broadcast %cst_9 : f32 to vector<16x256xf32>
    %14 = arith.select %10, %12, %13 : vector<16x256xi1>, vector<16x256xf32>
    %15 = arith.truncf %14 : vector<16x256xf32> to vector<16x256xbf16>
    %c0_10 = arith.constant 0 : index
    %c0_11 = arith.constant 0 : index
    %16 = vector.load %arg5[%c0_10, %c0_11] : memref<256x128xbf16, #tpu.memory_space<vmem>>, vector<256x128xbf16>
    %cst_12 = arith.constant dense<0.000000e+00> : vector<16x128xf32>
    %17 = tpu.matmul %15, %16, %cst_12 {dimension_numbers = #tpu.dot_dimension_numbers<[1], [0], [0], [1], [0, 0, 1, 1], [], []>} : vector<16x256xbf16>, vector<256x128xbf16>, vector<16x128xf32> -> vector<16x128xf32>
    %c0_13 = arith.constant 0 : index
    %c0_14 = arith.constant 0 : index
    %18 = vector.load %arg6[%c0_13, %c0_14] : memref<1x128xf32, #tpu.memory_space<vmem>>, vector<1x128xf32>
    %19 = vector.broadcast %18 : vector<1x128xf32> to vector<16x128xf32>
    %20 = arith.addf %17, %19 : vector<16x128xf32>
    %21 = arith.extf %0 : vector<16x128xbf16> to vector<16x128xf32>
    %22 = arith.addf %20, %21 : vector<16x128xf32>
    %cst_15 = arith.constant dense<0.000000e+00> : vector<16xf32>
    %23 = vector.multi_reduction <add>, %22, %cst_15 [1] : vector<16x128xf32> to vector<16xf32>
    %24 = vector.shape_cast %23 : vector<16xf32> to vector<16x1xf32>
    %cst_16 = arith.constant 1.280000e+02 : f32
    %25 = vector.broadcast %cst_16 : f32 to vector<16x1xf32>
    %26 = arith.divf %24, %25 : vector<16x1xf32>
    %27 = vector.broadcast %26 : vector<16x1xf32> to vector<16x128xf32>
    %28 = arith.subf %22, %27 : vector<16x128xf32>
    %29 = arith.mulf %28, %28 : vector<16x128xf32>
    %cst_17 = arith.constant dense<0.000000e+00> : vector<16xf32>
    %30 = vector.multi_reduction <add>, %29, %cst_17 [1] : vector<16x128xf32> to vector<16xf32>
    %31 = vector.shape_cast %30 : vector<16xf32> to vector<16x1xf32>
    %cst_18 = arith.constant 1.280000e+02 : f32
    %32 = vector.broadcast %cst_18 : f32 to vector<16x1xf32>
    %33 = arith.divf %31, %32 : vector<16x1xf32>
    %cst_19 = arith.constant 9.99999974E-6 : f32
    %34 = vector.broadcast %cst_19 : f32 to vector<16x1xf32>
    %35 = arith.addf %33, %34 : vector<16x1xf32>
    %36 = math.rsqrt %35 : vector<16x1xf32>
    %37 = vector.broadcast %36 : vector<16x1xf32> to vector<16x128xf32>
    %38 = arith.mulf %28, %37 : vector<16x128xf32>
    %c0_20 = arith.constant 0 : index
    %c0_21 = arith.constant 0 : index
    %39 = vector.load %arg7[%c0_20, %c0_21] : memref<1x128xf32, #tpu.memory_space<vmem>>, vector<1x128xf32>
    %40 = vector.broadcast %39 : vector<1x128xf32> to vector<16x128xf32>
    %41 = arith.mulf %38, %40 : vector<16x128xf32>
    %c0_22 = arith.constant 0 : index
    %c0_23 = arith.constant 0 : index
    %42 = vector.load %arg8[%c0_22, %c0_23] : memref<1x128xf32, #tpu.memory_space<vmem>>, vector<1x128xf32>
    %43 = vector.broadcast %42 : vector<1x128xf32> to vector<16x128xf32>
    %44 = arith.addf %41, %43 : vector<16x128xf32>
    %c0_24 = arith.constant 0 : index
    %c0_25 = arith.constant 0 : index
    %45 = vector.load %arg9[%c0_24, %c0_25] : memref<16x128xf32, #tpu.memory_space<vmem>>, vector<16x128xf32>
    tpu.vector_store %arg9[%c0_24, %c0_25], %44 {strides = array<i32>} : memref<16x128xf32, #tpu.memory_space<vmem>>, vector<16x128xf32>,
    return
  }
  func.func @transform_0(%arg0: i32) -> (i32, i32) {
    %c0_i32 = arith.constant 0 : i32
    %c0_i32_0 = arith.constant 0 : i32
    return %arg0, %c0_i32 : i32, i32
  }
  func.func @transform_1(%arg0: i32) -> (i32, i32) {
    %c0_i32 = arith.constant 0 : i32
    %c0_i32_0 = arith.constant 0 : i32
    return %arg0, %c0_i32 : i32, i32
  }
  func.func @transform_2(%arg0: i32) -> (i32, i32) {
    %c0_i32 = arith.constant 0 : i32
    %c0_i32_0 = arith.constant 0 : i32
    %c0_i32_1 = arith.constant 0 : i32
    return %c0_i32, %c0_i32_0 : i32, i32
  }
  func.func @transform_3(%arg0: i32) -> (i32, i32) {
    %c0_i32 = arith.constant 0 : i32
    %c0_i32_0 = arith.constant 0 : i32
    %c0_i32_1 = arith.constant 0 : i32
    return %c0_i32, %c0_i32_0 : i32, i32
  }
  func.func @transform_4(%arg0: i32) -> (i32, i32) {
    %c0_i32 = arith.constant 0 : i32
    %c0_i32_0 = arith.constant 0 : i32
    %c0_i32_1 = arith.constant 0 : i32
    return %c0_i32, %c0_i32_0 : i32, i32
  }
  func.func @transform_5(%arg0: i32) -> (i32, i32) {
    %c0_i32 = arith.constant 0 : i32
    %c0_i32_0 = arith.constant 0 : i32
    %c0_i32_1 = arith.constant 0 : i32
    return %c0_i32, %c0_i32_0 : i32, i32
  }
  func.func @transform_6(%arg0: i32) -> (i32, i32) {
    %c0_i32 = arith.constant 0 : i32
    %c0_i32_0 = arith.constant 0 : i32
    %c0_i32_1 = arith.constant 0 : i32
    return %c0_i32, %c0_i32_0 : i32, i32
  }
  func.func @transform_7(%arg0: i32) -> (i32, i32) {
    %c0_i32 = arith.constant 0 : i32
    %c0_i32_0 = arith.constant 0 : i32
    %c0_i32_1 = arith.constant 0 : i32
    return %c0_i32, %c0_i32_0 : i32, i32
  }
  func.func @transform_8(%arg0: i32) -> (i32, i32) {
    %c0_i32 = arith.constant 0 : i32
    %c0_i32_0 = arith.constant 0 : i32
    return %arg0, %c0_i32 : i32, i32
  }
}

</mosaic_0001>

<bundles_post_ra>
// kernel: tpu_custom_call.1
= control target key start
LH: loop header
LB: loop body
LE: loop exit
PB: predicated region body
PF: predicated region fallthrough
CT: control target
= control target key end

     0   :  { %13 = vsyncpa [#allocation3], 0  ;;  %s912_s0 = inlined_call_operand.hbm [shape: bf16[16,128], index: 0, kind: input, shape index: {}]   ;;  %s913_s1 = inlined_call_operand.hbm [shape: s8[16,256], index: 1, kind: input, shape index: {}]   ;;  %s914_s2 = inlined_call_operand.hbm [shape: bf16[128,256], index: 2, kind: input, shape index: {}]   ;;  %s915_s3 = inlined_call_operand.vmem [shape: f32[1,256], index: 3, kind: input, shape index: {}]   ;;  %s916_s4 = inlined_call_operand.hbm [shape: bf16[256,128], index: 4, kind: input, shape index: {}]   ;;  %s917_s5 = inlined_call_operand.vmem [shape: f32[1,128], index: 5, kind: input, shape index: {}]   ;;  %s918_s6 = inlined_call_operand.vmem [shape: f32[1,128], index: 6, kind: input, shape index: {}]   ;;  %s919_s7 = inlined_call_operand.vmem [shape: f32[1,128], index: 7, kind: input, shape index: {}]   ;;  %s920_s8 = inlined_call_operand.hbm [shape: f32[16,128], index: 8, kind: output, shape index: {}]  }
   0x1   :  { %14 = vsyncpa [#allocation6], 0 }
   0x2   :  { %15 = vsyncpa [#allocation9], 0 }
   0x3   :  { %16 = vsyncpa [#allocation4], 0  ;;  %s755_s27 = smov [#allocation5]   ;;  %s756_s29 = smov [#allocation2]  }
   0x4   :  { %s34_s28 = sshll.u32 %s755_s27, 4  ;;  %s22_s30 = sshll.u32 %s756_s29, 4  ;;  %s35_s28 = int_to_ptr.vmem [resolvable:$true] %s34_s28  ;;  %s810_s30 = int_to_ptr.vmem [resolvable:$true] %s22_s30 }
   0x5   :  { %s637_s11 = scalar_lea.hbm %s913_s1, 128 }
   0x6   :  { %p638_p0 = scmp.ne.s32.totalorder %s913_s1, %s637_s11  ;;  %p641_p1 = scmp.lt.u32.totalorder %s637_s11, %s913_s1 }
   0x8   :  { %p643_p2 = pnand %p641_p1, %p638_p0 }
   0xa   :  { %646 = shalt.err (!%p643_p2)
}
   0xb   :  { %s647_s16 = scalar_lea.vmem %s35_s28, 128  ;;  %p652_p4 = scmp.lt.s32.totalorder %s35_s28, %s35_s28 }
   0xc   :  { %p648_p3 = scmp.ne.s32.totalorder %s35_s28, %s647_s16  ;;  %p653_p5 = scmp.lt.s32.totalorder %s647_s16, %s647_s16 }
   0xe   :  { %p654_p6 = por %p653_p5, %p652_p4 }
  0x10   :  { %p655_p7 = pnand %p654_p6, %p648_p3 }
  0x12   :  { %658 = shalt.err (!%p655_p7)
}
  0x13   :  { %s757_s17 = smov 64   ;;  %s758_s18 = smov 4  }
  0x14   :  { %40 = dma.hbm_to_vmem [thread:$0]  %s913_s1, 128, %s35_s28, [#allocation6], %s757_s17, %s757_s17, %s758_s18  }
  0x15   :  { %s659_s23 = scalar_lea.hbm %s912_s0, 128 }
  0x16   :  { %p660_p8 = scmp.ne.s32.totalorder %s912_s0, %s659_s23  ;;  %p663_p9 = scmp.lt.u32.totalorder %s659_s23, %s912_s0 }
  0x18   :  { %p665_p10 = pnand %p663_p9, %p660_p8 }
  0x1a   :  { %668 = shalt.err (!%p665_p10)
}
  0x1b   :  { %s669_s29 = scalar_lea.vmem %s810_s30, 128  ;;  %p674_p12 = scmp.lt.s32.totalorder %s810_s30, %s810_s30 }
  0x1c   :  { %p670_p11 = scmp.ne.s32.totalorder %s810_s30, %s669_s29  ;;  %p675_p13 = scmp.lt.s32.totalorder %s669_s29, %s669_s29 }
  0x1e   :  { %p676_p0 = por %p675_p13, %p674_p12 }
  0x20   :  { %p677_p1 = pnand %p676_p0, %p670_p11 }
  0x22   :  { %680 = shalt.err (!%p677_p1)
}
  0x23   :  { %28 = dma.hbm_to_vmem [thread:$0]  %s912_s0, 128, %s810_s30, [#allocation3], %s757_s17, %s757_s17, %s758_s18  }
  0x24   :  { %s759_s9 = smov [#allocation7]   ;;  %s681_s13 = scalar_lea.hbm %s914_s2, 2048 }
  0x25   :  { %s46_s10 = sshll.u32 %s759_s9, 4  ;;  %p682_p2 = scmp.ne.s32.totalorder %s914_s2, %s681_s13  ;;  %s47_s10 = int_to_ptr.vmem [resolvable:$true] %s46_s10 }
  0x26   :  { %p685_p3 = scmp.lt.u32.totalorder %s681_s13, %s914_s2 }
  0x28   :  { %p687_p4 = pnand %p685_p3, %p682_p2 }
  0x2a   :  { %690 = shalt.err (!%p687_p4)
}
  0x2b   :  { %s691_s20 = scalar_lea.vmem %s47_s10, 2048  ;;  %p696_p6 = scmp.lt.s32.totalorder %s47_s10, %s47_s10 }
  0x2c   :  { %p692_p5 = scmp.ne.s32.totalorder %s47_s10, %s691_s20  ;;  %p697_p7 = scmp.lt.s32.totalorder %s691_s20, %s691_s20 }
  0x2e   :  { %p698_p8 = por %p697_p7, %p696_p6 }
  0x30   :  { %p699_p9 = pnand %p698_p8, %p692_p5 }
  0x32   :  { %702 = shalt.err (!%p699_p9)
}
  0x33   :  { %s760_s0 = smov 128   ;;  %s761_s30 = smov 8  }
  0x34   :  { %52 = dma.hbm_to_vmem [thread:$0]  %s914_s2, 2048, %s47_s10, [#allocation6], %s760_s0, %s760_s0, %s761_s30  }
  0x35   :  { %s762_s23 = smov [#allocation8]   ;;  %s703_s27 = scalar_lea.hbm %s916_s4, 2048 }
  0x36   :  { %s60_s24 = sshll.u32 %s762_s23, 4  ;;  %p704_p10 = scmp.ne.s32.totalorder %s916_s4, %s703_s27  ;;  %s61_s24 = int_to_ptr.vmem [resolvable:$true] %s60_s24 }
  0x37   :  { %p707_p11 = scmp.lt.u32.totalorder %s703_s27, %s916_s4 }
  0x39   :  { %p709_p12 = pnand %p707_p11, %p704_p10 }
  0x3b   :  { %712 = shalt.err (!%p709_p12)
}
  0x3c   :  { %s713_s11 = scalar_lea.vmem %s61_s24, 2048  ;;  %p718_p0 = scmp.lt.s32.totalorder %s61_s24, %s61_s24 }
  0x3d   :  { %p714_p13 = scmp.ne.s32.totalorder %s61_s24, %s713_s11  ;;  %p719_p1 = scmp.lt.s32.totalorder %s713_s11, %s713_s11 }
  0x3f   :  { %p720_p2 = por %p719_p1, %p718_p0 }
  0x41   :  { %p721_p3 = pnand %p720_p2, %p714_p13 }
  0x43   :  { %724 = shalt.err (!%p721_p3)
}
  0x44   :  { %66 = dma.hbm_to_vmem [thread:$0]  %s916_s4, 2048, %s61_s24, [#allocation9], %s757_s17, %s757_s17, %s758_s18  }
  0x45   :  { %747 = dma.done.wait [#allocation3], 128  }
  0x46   :  { %748 = vsyncadd [#allocation3], 4294967168 }
  0x47   :  { %749 = dma.done.wait [#allocation6], 2176  }
  0x48   :  { %750 = vsyncadd [#allocation6], 4294965120 }
  0x49   :  { %751 = dma.done.wait [#allocation9], 2048  }
  0x4a   :  { %752 = vsyncadd [#allocation9], 4294965248  ;;  %v763_v0 = vmov 0   ;;  %v591_v1 = vld [vmem:[#allocation7 + $0x4] ss:$8 sps:$4 sm:$0xff]   ;;  %v620_v15 = vld [vmem:[#allocation8 + $0x50] sm:$0xff]   ;;  %v108_v34 = vlaneseq }
  0x4b   :  { %236 = vmatprep.mubr.bf16.mxu0 %v763_v0  ;;  %v593_v2 = vld [vmem:[#allocation7] ss:$8 sps:$4 sm:$0xff]   ;;  %204 = vmatprep.subr.bf16.mxu0 %v591_v1  ;;  %v594_v3 = vld [vmem:[#allocation7 + $0x14] ss:$8 sps:$4 sm:$0xff]   ;;  %v596_v4 = vld [vmem:[#allocation7 + $0x10] ss:$8 sps:$4 sm:$0xff]  }
  0x4c   :  { %205 = vmatpush1.bf16.msra.mxu0 %v593_v2  ;;  %v597_v5 = vld [vmem:[#allocation7 + $0x24] ss:$8 sps:$4 sm:$0xff]   ;;  %v599_v6 = vld [vmem:[#allocation7 + $0x20] ss:$8 sps:$4 sm:$0xff]   ;;  %v600_v7 = vld [vmem:[#allocation7 + $0x34] ss:$8 sps:$4 sm:$0xff]  }
  0x4d   :  { %206 = vmatprep.subr.bf16.mxu0 %v594_v3  ;;  %v602_v8 = vld [vmem:[#allocation7 + $0x30] ss:$8 sps:$4 sm:$0xff]   ;;  %v603_v9 = vld [vmem:[#allocation7 + $0x44] ss:$8 sps:$4 sm:$0xff]   ;;  %v605_v12 = vld [vmem:[#allocation7 + $0x40] ss:$8 sps:$4 sm:$0xff]  }
  0x4e   :  { %v616_v10 = vld [vmem:[#allocation8 + $0x40] sm:$0xff]   ;;  %v618_v13 = vld [vmem:[#allocation8 + $0x48] sm:$0xff]   ;;  %v606_v16 = vld [vmem:[#allocation7 + $0x54] ss:$8 sps:$4 sm:$0xff]   ;;  %v109_v35 = vshrl.u32 %v108_v34, 7  ;;  %s764_s15 = smov [#allocation10]  }
  0x4f   :  { %v617_v11 = vld [vmem:[#allocation8] sm:$0xff]   ;;  %559 = vmatprep.subr.bf16.mxu1 %v616_v10  ;;  %v619_v14 = vld [vmem:[#allocation8 + $0x8] sm:$0xff]   ;;  %v608_v17 = vld [vmem:[#allocation7 + $0x50] ss:$8 sps:$4 sm:$0xff]   ;;  %s503_s16 = sshll.u32 %s764_s15, 4  ;;  %s504_s16 = int_to_ptr.vmem [resolvable:$true] %s503_s16 }
  0x50   :  { %207 = vmatpush1.bf16.msra.mxu0 %v596_v4  ;;  %560 = vmatpush3.bf16.msra.mxu1 %v617_v11  ;;  %v609_v18 = vld [vmem:[#allocation7 + $0x64] ss:$8 sps:$4 sm:$0xff]   ;;  %v621_v19 = vld [vmem:[#allocation8 + $0x10] sm:$0xff]   ;;  %v622_v20 = vld [vmem:[#allocation8 + $0x58] sm:$0xff]   ;;  %v110_v36 = vsub.s32 0, %v109_v35  ;;  %v114_v40 = vsub.s32 1, %v109_v35  ;;  %p730_p5 = scmp.lt.s32.totalorder %s504_s16, %s504_s16 }
  0x51   :  { %208 = vmatprep.subr.bf16.mxu0 %v597_v5  ;;  %561 = vmatprep.subr.bf16.mxu1 %v618_v13  ;;  %v623_v21 = vld [vmem:[#allocation8 + $0x18] sm:$0xff]   ;;  %v611_v22 = vld [vmem:[#allocation7 + $0x60] ss:$8 sps:$4 sm:$0xff]   ;;  %v878_v27 = vld [vmem:[#allocation2] sm:$0xff]   ;;  %s725_s19 = scalar_lea.vmem %s504_s16, 256 }
  0x52   :  { %v624_v23 = vld [vmem:[#allocation8 + $0x60] sm:$0xff]   ;;  %v612_v24 = vld [vmem:[#allocation7 + $0x74] ss:$8 sps:$4 sm:$0xff]   ;;  %v614_v26 = vld [vmem:[#allocation7 + $0x70] ss:$8 sps:$4 sm:$0xff]   ;;  %p726_p4 = scmp.ne.s32.totalorder %s504_s16, %s725_s19  ;;  %p731_p6 = scmp.lt.s32.totalorder %s725_s19, %s725_s19 }
  0x53   :  { %v625_v25 = vld [vmem:[#allocation8 + $0x20] sm:$0xff]   ;;  %v626_v28 = vld [vmem:[#allocation8 + $0x68] sm:$0xff]   ;;  %v628_v30 = vld [vmem:[#allocation8 + $0x70] sm:$0xff]  }
  0x54   :  { %209 = vmatpush1.bf16.msra.mxu0 %v599_v6  ;;  %562 = vmatpush3.bf16.msra.mxu1 %v619_v14  ;;  %v627_v29 = vld [vmem:[#allocation8 + $0x28] sm:$0xff]   ;;  %v629_v31 = vld [vmem:[#allocation8 + $0x30] sm:$0xff]   ;;  %v630_v32 = vld [vmem:[#allocation8 + $0x78] sm:$0xff]   ;;  %v452_v14 = vunpack.c.h.bf16 %v878_v27  ;;  %p732_p7 = por %p731_p6, %p730_p5 }
  0x55   :  { %210 = vmatprep.subr.bf16.mxu0 %v600_v7  ;;  %563 = vmatprep.subr.bf16.mxu1 %v620_v15  ;;  %v631_v33 = vld [vmem:[#allocation8 + $0x38] sm:$0xff]   ;;  %v106_v39 = vld [vmem:[%s915_s3] sm:$0x3] }
  0x56   :  { %v251_v37 = vld [vmem:[#allocation5] sm:$0xf]  ;;  %v252_v38 = vld [vmem:[#allocation5 + $0x4] sm:$0xf]  ;;  %v111_v41 = vrot.slane %v106_v39, %v110_v36  ;;  %v115_v42 = vrot.slane %v106_v39, %v114_v40  ;;  %v534_v4 = vld [vmem:[%s917_s5] ss:$0 sm:$0xff]  ;;  %p733_p8 = pnand %p732_p7, %p726_p4 }
  0x57   :  { %vm253_vm0 = vnez %v251_v37  ;;  %vm254_vm1 = vnez %v252_v38 }
  0x58   :  { %211 = vmatpush1.bf16.msra.mxu0 %v602_v8  ;;  %564 = vmatpush3.bf16.msra.mxu1 %v621_v19  ;;  %v259_v43 = vsel %vm253_vm0, 16843009, %v763_v0  ;;  %v260_v44 = vsel %vm254_vm1, 16843009, %v763_v0  ;;  %v451_v8 = vunpack.c.l.bf16 %v878_v27 }
  0x59   :  { %212 = vmatprep.subr.bf16.mxu0 %v603_v9  ;;  %565 = vmatprep.subr.bf16.mxu1 %v622_v20  ;;  %v262_v50 = vunpack.c.1.s8 %v259_v43  ;;  %v264_v51 = vunpack.c.1.s8 %v260_v44  ;;  %v261_v55 = vunpack.c.0.s8 %v259_v43  ;;  %v263_v56 = vunpack.c.0.s8 %v260_v44 }
  0x5b   :  { %vm266_vm2 = vcmp.ne.s32.totalorder %v262_v50, 0  ;;  %vm268_vm3 = vcmp.ne.s32.totalorder %v264_v51, 0  ;;  %vm265_vm4 = vcmp.ne.s32.totalorder %v261_v55, 0  ;;  %vm267_vm5 = vcmp.ne.s32.totalorder %v263_v56, 0 }
  0x5c   :  { %213 = vmatpush1.bf16.msra.mxu0 %v605_v12  ;;  %566 = vmatpush3.bf16.msra.mxu1 %v623_v21  ;;  %vm551_vm6 = vmpackc.low %vm268_vm3, %vm266_vm2 }
  0x5d   :  { %214 = vmatprep.subr.bf16.mxu0 %v606_v16  ;;  %567 = vmatprep.subr.bf16.mxu1 %v624_v23  ;;  %vm554_vm7 = vmpackc.low %vm267_vm5, %vm265_vm4 }
  0x60   :  { %215 = vmatpush1.bf16.msra.mxu0 %v608_v17  ;;  %568 = vmatpush3.bf16.msra.mxu1 %v625_v25 }
  0x61   :  { %216 = vmatprep.subr.bf16.mxu0 %v609_v18  ;;  %569 = vmatprep.subr.bf16.mxu1 %v626_v28 }
  0x64   :  { %217 = vmatpush1.bf16.msra.mxu0 %v611_v22  ;;  %570 = vmatpush3.bf16.msra.mxu1 %v627_v29 }
  0x65   :  { %218 = vmatprep.subr.bf16.mxu0 %v612_v24  ;;  %571 = vmatprep.subr.bf16.mxu1 %v628_v30 }
  0x68   :  { %219 = vmatpush1.bf16.msra.mxu0 %v614_v26  ;;  %572 = vmatpush3.bf16.msra.mxu1 %v629_v31  ;;  %v557_v31 = vld [vmem:[%s918_s6] ss:$0 sm:$0xff] }
  0x69   :  { %573 = vmatprep.subr.bf16.mxu1 %v630_v32 }
  0x6b   :  { %237 = vmatmul.mubr.bf16.vlgmr.msra.gmra.mrb[0].mxu0 %v878_v27 }
  0x6c   :  { %574 = vmatpush3.bf16.msra.mxu1 %v631_v33  ;;  %v558_v33 = vld [vmem:[%s919_s7] ss:$0 sm:$0xff] }
 0x13e   :  { %v238_v45 = vpop.f32.mrb[0].mxu0 }
 0x13f   :  { %v239_v46 = vadd.f32 %v238_v45, %v111_v41  ;;  %v240_v47 = vpop.f32.mrb[1].mxu0 }
 0x140   :  { %v241_v48 = vadd.f32 %v240_v47, %v115_v42  ;;  %v242_v49 = vpop.f32.mrb[2].mxu0 }
 0x141   :  { %v247_v52 = vmax.f32 %v239_v46, 0.0  ;;  %v243_v53 = vadd.f32 %v242_v49, %v111_v41  ;;  %v244_v54 = vpop.f32.mrb[3].mxu0 }
 0x142   :  { %v248_v57 = vmax.f32 %v241_v48, 0.0  ;;  %v245_v58 = vadd.f32 %v244_v54, %v115_v42 }
 0x143   :  { %v249_v59 = vmax.f32 %v243_v53, 0.0  ;;  %v255_v61 = vmul.f32 1.1111112, %v247_v52 }
 0x144   :  { %v250_v60 = vmax.f32 %v245_v58, 0.0  ;;  %v256_v63 = vmul.f32 1.1111112, %v248_v57 }
 0x145   :  { %v257_v62 = vmul.f32 1.1111112, %v249_v59 }
 0x146   :  { %v258_v0 = vmul.f32 1.1111112, %v250_v60 }
 0x147   :  { %v555_v1 = vpack.c.bf16 %v257_v62, %v255_v61 }
 0x148   :  { %v552_v2 = vpack.c.bf16 %v258_v0, %v256_v63 }
 0x14a   :  { %553 = vmatprep.mubr.msk.bf16.mxu1 %vm551_vm6, %v552_v2 }
 0x14b   :  { %556 = vmatmul.mubr.msk.bf16.vlgmr.msra.gmra.mrb[0].mxu1 %vm554_vm7, %v555_v1 }
 0x21e   :  { %v575_v3 = vpop.f32.mrb[0].mxu1 }
 0x21f   :  { %v576_v5 = vpop.f32.mrb[1].mxu1 }
 0x220   :  { %v577_v6 = vadd.f32 %v576_v5, %v575_v3  ;;  %v578_v7 = vpop.f32.mrb[2].mxu1 }
 0x221   :  { %v579_v9 = vpop.f32.mrb[3].mxu1 }
 0x222   :  { %v445_v10 = vadd.f32 %v577_v6, %v534_v4  ;;  %v580_v11 = vadd.f32 %v579_v9, %v578_v7 }
 0x224   :  { %v448_v12 = vadd.f32 %v580_v11, %v534_v4  ;;  %v453_v13 = vadd.f32 %v451_v8, %v445_v10 }
 0x226   :  { %455 = vadd.xlane.f32.xlu0 %v453_v13  ;;  %v454_v15 = vadd.f32 %v452_v14, %v448_v12 }
 0x22a   :  { %457 = vadd.xlane.f32.xlu0 %v454_v15 }
 0x2b3   :  { %v456_v16 = vpop.xlane.xlu0 %455 }
 0x2b4   :  { %v460_v17 = vmul.f32 0.0078125, %v456_v16 }
 0x2b6   :  { %v462_v18 = vsub.f32 %v453_v13, %v460_v17 }
 0x2b7   :  { %v458_v19 = vpop.xlane.xlu0 %457 }
 0x2b8   :  { %v461_v20 = vmul.f32 0.0078125, %v458_v19  ;;  %v464_v21 = vmul.f32 %v462_v18, %v462_v18 }
 0x2ba   :  { %v463_v22 = vsub.f32 %v454_v15, %v461_v20  ;;  %466 = vadd.xlane.f32.xlu1 %v464_v21 }
 0x2bc   :  { %v465_v23 = vmul.f32 %v463_v22, %v463_v22 }
 0x2be   :  { %468 = vadd.xlane.f32.xlu1 %v465_v23 }
 0x347   :  { %v467_v24 = vpop.xlane.xlu1 %466 }
 0x348   :  { %v470_v25 = vmul.f32 0.0078125, %v467_v24 }
 0x34a   :  { %v472_v26 = vadd.f32 1e-05, %v470_v25 }
 0x34b   :  { %v469_v28 = vpop.xlane.xlu1 %468 }
 0x34c   :  { %633 = vrsqrt.f32 %v472_v26  ;;  %v471_v29 = vmul.f32 0.0078125, %v469_v28 }
 0x34e   :  { %v473_v27 = vadd.f32 1e-05, %v471_v29 }
 0x350   :  { %635 = vrsqrt.f32 %v473_v27 }
 0x356   :  { %v634_v30 = vpop.eup %633 }
 0x357   :  { %v476_v32 = vmul.f32 %v634_v30, %v462_v18 }
 0x359   :  { %v485_v34 = vmul.f32 %v557_v31, %v476_v32 }
 0x35a   :  { %v636_v35 = vpop.eup %635 }
 0x35b   :  { %v477_v36 = vmul.f32 %v636_v35, %v463_v22  ;;  %v494_v37 = vadd.f32 %v558_v33, %v485_v34 }
 0x35d   :  { %v486_v38 = vmul.f32 %v557_v31, %v477_v36  ;;  %496 = vst [vmem:[#allocation10] sm:$0xff] %v494_v37 }
 0x35f   :  { %v495_v39 = vadd.f32 %v558_v33, %v486_v38 }
 0x361   :  { %497 = vst [vmem:[#allocation10 + $0x8] sm:$0xff] %v495_v39 }
 0x362   :  { %736 = shalt.err (!%p733_p8)
}
 0x363   :  { %s737_s20 = scalar_lea.hbm %s920_s8, 256 }
 0x364   :  { %p738_p9 = scmp.ne.s32.totalorder %s920_s8, %s737_s20  ;;  %p741_p10 = scmp.lt.u32.totalorder %s737_s20, %s920_s8 }
 0x366   :  { %p743_p11 = pnand %p741_p10, %p738_p9 }
 0x368   :  { %746 = shalt.err (!%p743_p11)
}
 0x369   :  { %509 = dma.vmem_to_hbm [thread:$0]  %s504_s16, 256, %s920_s8, [#allocation4], %s760_s0, %s760_s0, %s761_s30  }
 0x36a   :  { %753 = dma.done.wait [#allocation4], 256  }
 0x36b   :  { %754 = vsyncadd [#allocation4], 4294967040 }
 0x36c   :  { %513 = vsyncpa [#allocation3], 1 }
 0x36d   :  { %514 = vsyncpa [#allocation6], 1 }
 0x36e   :  { %515 = vsyncpa [#allocation9], 1 }
 0x36f   :  { %516 = vsyncpa [#allocation4], 1 }

</bundles_post_ra>
